<compile_context>
chip_gen: v6e
topology: v6e:2x2x1
jax: 0.10.0
libtpu: 0.0.40
codegen_flags: <defaults>
</compile_context>

<pallas_src>
import numpy as np
import jax
import jax.numpy as jnp
from jax.experimental import pallas as pl
from jax.experimental.pallas import tpu as pltpu


# ----------------------------------------------------------------------------
# Pallas kernel: per-token gathered embedding row + gathered PE row -> output
# ----------------------------------------------------------------------------
def _gather_add_pe_kernel(ids_ref, pos_ref, emb_row_ref, pe_row_ref, out_ref):
    # ids_ref/pos_ref: SMEM scalar-prefetch refs (only used by the index_maps)
    # emb_row_ref, pe_row_ref, out_ref: (1, 1, D) f32 VMEM tiles
    del ids_ref, pos_ref
    out_ref[...] = emb_row_ref[...] + pe_row_ref[...]


def fused_embed_and_encode(ids_all, pos_all, emb_table, pe_table):
    """ids_all: (N,) int32 rows into emb_table, pos_all: (N,) int32 rows into
    pe_table, emb_table: (Vtot, D) f32, pe_table: (max_len, D) f32
    -> (N, D) f32 = emb_table[ids_all] + pe_table[pos_all]."""
    N = ids_all.shape[0]
    Vtot, D = emb_table.shape
    Lmax = pe_table.shape[0]

    # Present tables as (rows, 1, D) so the blocked last-two dims equal the
    # full array dims (layout-friendly, lane-dense D).
    emb3 = emb_table.reshape(Vtot, 1, D)
    pe3 = pe_table.reshape(Lmax, 1, D)

    out = pl.pallas_call(
        _gather_add_pe_kernel,
        out_shape=jax.ShapeDtypeStruct((N, 1, D), jnp.float32),
        grid_spec=pltpu.PrefetchScalarGridSpec(
            num_scalar_prefetch=2,                       # ids, pos -> SMEM
            grid=(N,),
            in_specs=[
                # data-dependent row gather of the embedding table (stays in HBM,
                # only the needed row is DMA'd per grid step, double-buffered)
                pl.BlockSpec((1, 1, D), lambda i, ids, pos: (ids[i], 0, 0)),
                # gathered positional-encoding row
                pl.BlockSpec((1, 1, D), lambda i, ids, pos: (pos[i], 0, 0)),
            ],
            out_specs=pl.BlockSpec((1, 1, D), lambda i, ids, pos: (i, 0, 0)),
        ),
        compiler_params=pltpu.CompilerParams(
            dimension_semantics=("parallel",),           # megacore-shardable
        ),
        cost_estimate=pl.CostEstimate(
            flops=N * D,
            transcendentals=0,
            bytes_accessed=3 * N * D * 4 + 2 * N * 4,    # emb + pe + out + ids/pos
        ),
    )(ids_all, pos_all, emb3, pe3)
    return out.reshape(N, D)


# ----------------------------------------------------------------------------
# Parameter setup (deterministic) and plain-JAX glue
# ----------------------------------------------------------------------------
def sinusoidal_positional_encoding(max_len, d_model):
    """Standard PyTorch-tutorial PositionalEncoding table (max_len, d_model)."""
    position = np.arange(max_len)[:, None].astype(np.float32)
    div_term = np.exp(np.arange(0, d_model, 2).astype(np.float32)
                      * (-np.log(10000.0) / d_model))
    pe = np.zeros((max_len, d_model), dtype=np.float32)
    pe[:, 0::2] = np.sin(position * div_term)
    pe[:, 1::2] = np.cos(position * div_term)
    return jnp.asarray(pe)


def precontinuous_block_forward(x, y, params, *, split_target=True):
    """JAX/Pallas equivalent of PreContinuousBlock.forward(x=..., y=...)."""
    src_pad_id = params["src_pad_id"]
    tgt_pad_id = params["tgt_pad_id"]
    emb_enc = params["embedding_encoder"]            # (Vs, D)
    emb_dec = params["embedding_decoder"]            # (Vt, D)
    pe_full = params["pe"]                           # (max_len, D)
    Vs, D = emb_enc.shape

    B, S = x.shape

    # ---------------- masks / labels (cheap scalar/bool glue) ----------------
    src_padding_mask = (x == src_pad_id)             # (B, S) bool
    mem_padding_mask = src_padding_mask

    if split_target:
        tgt = y[:, :-1]
        labels = y[:, 1:]
    else:
        tgt = y
        labels = None
    Lp = tgt.shape[1]

    # nn.Transformer.generate_square_subsequent_mask: 0 on/below diag, -inf above
    row = jnp.arange(Lp)[:, None]
    col = jnp.arange(Lp)[None, :]
    tgt_attention_mask = jnp.where(col > row, -jnp.inf, 0.0).astype(jnp.float32)
    tgt_padding_mask = (tgt == tgt_pad_id)           # (B, Lp) bool

    # ---------------- fused src + tgt embedding (single Pallas launch) -------
    # Token streams in (seq, batch) row-major order, matching transpose(0, 1).
    src_tokens = jnp.transpose(x, (1, 0)).reshape(-1).astype(jnp.int32)    # (S*B,)
    tgt_tokens = jnp.transpose(tgt, (1, 0)).reshape(-1).astype(jnp.int32)  # (Lp*B,)
    # Decoder ids are offset by Vs into the concatenated (Vs+Vt, D) table.
    ids_all = jnp.concatenate([src_tokens, tgt_tokens + Vs])
    pos_all = jnp.concatenate([
        jnp.repeat(jnp.arange(S, dtype=jnp.int32), B),
        jnp.repeat(jnp.arange(Lp, dtype=jnp.int32), B),
    ])
    emb_all = jnp.concatenate([emb_enc, emb_dec], axis=0)                  # (Vs+Vt, D)
    # NOTE: like nn.Embedding, ids are assumed in-range; out-of-range ids are
    # not checked here (they would address past the table row range).

    flat = fused_embed_and_encode(ids_all, pos_all, emb_all, pe_full)      # (N, D)
    n_src = S * B
    x_emb = flat[:n_src].reshape(S, B, D)            # (S, B, D)
    y_emb = flat[n_src:].reshape(Lp, B, D)           # (Lp, B, D)
    # TODO(synk): PositionalEncoding dropout omitted (eval-mode identity).

    return {
        "x": x_emb,
        "src_padding_mask": src_padding_mask,
        "mem_padding_mask": mem_padding_mask,
        "y": y_emb,
        "tgt_attention_mask": tgt_attention_mask,
        "tgt_padding_mask": tgt_padding_mask,
        "target": labels,
    }


if __name__ == "__main__":
    key = jax.random.PRNGKey(0)
    k1, k2, k3, k4 = jax.random.split(key, 4)

    B, S, T = 2, 16, 9            # batch, src seq len, tgt seq len (tgt inputs = 8)
    D = 128                       # model_dimension (lane-dense output)
    Vs, Vt = 13, 11               # len(source_vocabulary), len(target_vocabulary)
    SRC_PAD, TGT_PAD = 0, 0       # vocabulary pad_id

    # nn.Embedding default init ~ N(0, 1)
    emb_enc = jax.random.normal(k1, (Vs, D), dtype=jnp.float32)
    emb_dec = jax.random.normal(k2, (Vt, D), dtype=jnp.float32)
    pe = sinusoidal_positional_encoding(max_len=64, d_model=D)

    x = jax.random.randint(k3, (B, S), 0, Vs, dtype=jnp.int32)
    y = jax.random.randint(k4, (B, T), 0, Vt, dtype=jnp.int32)
    # force some pad tokens so the padding masks are non-trivial
    x = x.at[:, -2:].set(SRC_PAD)
    y = y.at[:, -1:].set(TGT_PAD)

    params = {
        "embedding_encoder": emb_enc,
        "embedding_decoder": emb_dec,
        "pe": pe,
        "src_pad_id": SRC_PAD,
        "tgt_pad_id": TGT_PAD,
    }

    out = precontinuous_block_forward(x, y, params, split_target=True)
    jax.tree_util.tree_map(jax.block_until_ready, out)

    # shape checks
    assert out["x"].shape == (S, B, D)
    assert out["y"].shape == (T - 1, B, D)
    assert out["tgt_attention_mask"].shape == (T - 1, T - 1)
    assert out["src_padding_mask"].shape == (B, S)
    assert out["target"].shape == (B, T - 1)

    # numerical check vs a plain-JAX reference (embedding lookup + PE add,
    # matching the module: no sqrt(d_model) scaling in the given spec)
    src_lb = jnp.transpose(x, (1, 0))
    tgt_lb = jnp.transpose(y[:, :-1], (1, 0))
    x_ref = jnp.take(emb_enc, src_lb, axis=0) + pe[:S][:, None, :]
    y_ref = jnp.take(emb_dec, tgt_lb, axis=0) + pe[:T - 1][:, None, :]
    assert jnp.allclose(out["x"], x_ref, atol=1e-6), "src embedding mismatch"
    assert jnp.allclose(out["y"], y_ref, atol=1e-6), "tgt embedding mismatch"

    print("KERNEL_OK")
</pallas_src>

<mosaic_0001>
module attributes {stable_mosaic.version = 11 : i64} {
  func.func @_gather_add_pe_kernel(%arg0: i32, %arg1: memref<48xi32, #tpu.memory_space<smem>>, %arg2: memref<48xi32, #tpu.memory_space<smem>>, %arg3: memref<1x1x128xf32, #tpu.memory_space<vmem>>, %arg4: memref<1x1x128xf32, #tpu.memory_space<vmem>>, %arg5: memref<1x1x128xf32, #tpu.memory_space<vmem>>) attributes {dimension_semantics = [#tpu.dimension_semantics<parallel>], iteration_bounds = array<i64: 48>, scalar_prefetch = 2 : i64, scratch_operands = 0 : i64, tpu.core_type = #tpu.core_type<tc>, window_params = [{transform_indices = @transform_0, window_bounds = array<i64: 1, 1, 128>}, {transform_indices = @transform_1, window_bounds = array<i64: 1, 1, 128>}, {transform_indices = @transform_2, window_bounds = array<i64: 1, 1, 128>}]} {
    %c0 = arith.constant 0 : index
    %c0_0 = arith.constant 0 : index
    %c0_1 = arith.constant 0 : index
    %0 = vector.load %arg3[%c0, %c0_0, %c0_1] : memref<1x1x128xf32, #tpu.memory_space<vmem>>, vector<1x1x128xf32>
    %c0_2 = arith.constant 0 : index
    %c0_3 = arith.constant 0 : index
    %c0_4 = arith.constant 0 : index
    %1 = vector.load %arg4[%c0_2, %c0_3, %c0_4] : memref<1x1x128xf32, #tpu.memory_space<vmem>>, vector<1x1x128xf32>
    %2 = arith.addf %0, %1 : vector<1x1x128xf32>
    %c0_5 = arith.constant 0 : index
    %c0_6 = arith.constant 0 : index
    %c0_7 = arith.constant 0 : index
    %3 = vector.load %arg5[%c0_5, %c0_6, %c0_7] : memref<1x1x128xf32, #tpu.memory_space<vmem>>, vector<1x1x128xf32>
    tpu.vector_store %arg5[%c0_5, %c0_6, %c0_7], %2 {strides = array<i32>} : memref<1x1x128xf32, #tpu.memory_space<vmem>>, vector<1x1x128xf32>,
    return
  }
  func.func @transform_0(%arg0: i32, %arg1: memref<48xi32, #tpu.memory_space<smem>>, %arg2: memref<48xi32, #tpu.memory_space<smem>>) -> (i32, i32, i32) {
    %0 = arith.index_cast %arg0 : i32 to index
    %1 = memref.load %arg1[%0] : memref<48xi32, #tpu.memory_space<smem>>
    %c0_i32 = arith.constant 0 : i32
    %c0_i32_0 = arith.constant 0 : i32
    %c0_i32_1 = arith.constant 0 : i32
    return %1, %c0_i32, %c0_i32_0 : i32, i32, i32
  }
  func.func @transform_1(%arg0: i32, %arg1: memref<48xi32, #tpu.memory_space<smem>>, %arg2: memref<48xi32, #tpu.memory_space<smem>>) -> (i32, i32, i32) {
    %0 = arith.index_cast %arg0 : i32 to index
    %1 = memref.load %arg2[%0] : memref<48xi32, #tpu.memory_space<smem>>
    %c0_i32 = arith.constant 0 : i32
    %c0_i32_0 = arith.constant 0 : i32
    %c0_i32_1 = arith.constant 0 : i32
    return %1, %c0_i32, %c0_i32_0 : i32, i32, i32
  }
  func.func @transform_2(%arg0: i32, %arg1: memref<48xi32, #tpu.memory_space<smem>>, %arg2: memref<48xi32, #tpu.memory_space<smem>>) -> (i32, i32, i32) {
    %c0_i32 = arith.constant 0 : i32
    %c0_i32_0 = arith.constant 0 : i32
    %c0_i32_1 = arith.constant 0 : i32
    return %arg0, %c0_i32, %c0_i32_0 : i32, i32, i32
  }
}

</mosaic_0001>

<bundles_post_ra>
// kernel: tpu_custom_call.1
= control target key start
LH: loop header
LB: loop body
LE: loop exit
PB: predicated region body
PF: predicated region fallthrough
CT: control target
= control target key end

     0   :  { %s621_s15 = smov [#allocation3]   ;;  %s917_s0 = inlined_call_operand.hbm [shape: s32[48], index: 0, kind: input, shape index: {}]   ;;  %s918_s2 = inlined_call_operand.hbm [shape: f32[24,1,128], index: 2, kind: input, shape index: {}]   ;;  %s919_s3 = inlined_call_operand.hbm [shape: f32[64,1,128], index: 3, kind: input, shape index: {}]   ;;  %s920_s4 = inlined_call_operand.hbm [shape: f32[48,1,128], index: 4, kind: output, shape index: {}]   ;;  %s921_s1 = inlined_call_operand.vmem [shape: s32[48], index: 1, kind: input, shape index: {}]  }
   0x1   :  { %10 = dma.hbm_to_smem %s917_s0, 16, %s621_s15, [#allocation2] }
   0x2   :  { %s11_s20 = sshll.u32 %s921_s1, 4  ;;  %s12_s20 = int_to_ptr.vmem [resolvable:$true] %s11_s20 }
   0x3   :  { %s433_s21 = scalar_lea.vmem %s12_s20, 16  ;;  %p438_p1 = scmp.lt.s32.totalorder %s12_s20, %s12_s20 }
   0x4   :  { %p434_p0 = scmp.ne.s32.totalorder %s12_s20, %s433_s21  ;;  %p439_p2 = scmp.lt.s32.totalorder %s433_s21, %s433_s21 }
   0x6   :  { %p440_p3 = por %p439_p2, %p438_p1 }
   0x8   :  { %p441_p4 = pnand %p440_p3, %p434_p0 }
   0xa   :  { %444 = shalt.err (!%p441_p4)  }
   0xb   :  { %s622_s22 = smov [#allocation4]  }
   0xc   :  { %14 = dma.vmem_to_smem %s12_s20, 16, %s622_s22, [#allocation2] }
   0xd   :  { %567 = dma.done.wait [#allocation2], 32 }
   0xe   :  { %568 = vsyncadd [#allocation2], 4294967264 }
   0xf   :  { %16 = sfence }
  0x10   :  { %17 = vsyncpa [#allocation6], 0 }
  0x11   :  { %19 = vsyncpa [#allocation6 + $0x1], 0 }
  0x12   :  { %20 = vsyncpa [#allocation9], 0 }
  0x13   :  { %22 = vsyncpa [#allocation9 + $0x1], 0 }
  0x14   :  { %23 = vsyncpa [#allocation7], 0 }
  0x15   :  { %25 = vsyncpa [#allocation7 + $0x1], 0  ;;  %s657_s0 = smov 0   ;;  %s659_s1 = smov 0  }
  0x16   :  { %s661_s23 = smov 0   ;;  %s663_s24 = smov 0  }
  0x17   :  { %s665_s25 = smov 0   ;;  %s667_s26 = smov 0  }
  0x18   :  { %s669_s27 = smov 0   ;;  %s671_s28 = smov 0  }
  0x19   :  { %s673_s29 = smov 0   ;;  %s675_s30 = smov 0  }
  0x1a LB: > { %931 = sst [smem:[#allocation19_spill]] %s591_s23  ;;  %s706_s5 = sadd.s32 4294967295, %s619_s30   ;;  %s619_s30 = sphi %s675_s30, %s966_s30   ;;  %s615_s29 = sphi %s673_s29, %s958_s29   ;;  %s611_s28 = sphi %s671_s28, %s965_s28   ;;  %s607_s27 = sphi %s669_s27, %s964_s27   ;;  %s603_s26 = sphi %s667_s26, %s963_s26   ;;  %s599_s25 = sphi %s665_s25, %s962_s25   ;;  %s595_s24 = sphi %s663_s24, %s961_s24   ;;  %s591_s23 = sphi %s661_s23, %s956_s23   ;;  %s587_s1 = sphi %s659_s1, %s960_s1   ;;  %s583_s0 = sphi %s657_s0, %s959_s0  }
  0x1b   : > { %932 = sst [smem:[#allocation20_spill]] %s615_s29  ;;  %s307_s6 = sadd.s32 4294967294, %s619_s30  }
  0x1c   : > { %s710_s7 = sadd.s32 1, %s619_s30   ;;  %s35_s8 = sld [smem:[#allocation3 + %s619_s30]] }
  0x1d   : > { %s36_s9 = sld [smem:[#allocation3 + %s710_s7]]  ;;  %s40_s10 = sadd.s32 1, %s615_s29 }
  0x1e   : > { %p47_p5 = scmp.ne.s32.totalorder %s615_s29, %s611_s28  ;;  %p927_p6 = scmp.eq.s32.totalorder %s619_s30, 0 }
  0x1f   : > { %p53_p7 = scmp.ne.s32.totalorder %s611_s28, %s607_s27  ;;  %p926_p8 = scmp.eq.s32.totalorder %s706_s5, 0 }
  0x20   : > { %p722_p9 = por %p927_p6, %p47_p5  ;;  %s91_s12 = ssub.s32 %s619_s30, %s710_s7 }
  0x21   : > { %p730_p10 = por %p926_p8, %p53_p7  ;;  %p92_p11 = scmp.eq.s32.totalorder %s91_s12, 0 }
  0x22   : > { %s94_s14 = sadd.s32 1, %s591_s23  ;;  %p104_p12 = scmp.ne.s32.totalorder %s591_s23, %s587_s1 }
  0x23   : > { %s934_s13 = scalar_select %p730_p10, 1, 0 }
  0x24   : > { %s37_s15 = ssub.s32 %s35_s8, %s36_s9  ;;  %p105_p13 = scmp.eq.s32.totalorder %s706_s5, 47 }
  0x25   : > { %p38_p0 = scmp.eq.s32.totalorder %s37_s15, 0  ;;  %p110_p1 = scmp.ne.s32.totalorder %s587_s1, %s583_s0 }
  0x26   : > { %s741_s16 = scalar_select %p92_p11, %s591_s23, %s94_s14  }
  0x27   : > { %s744_s17 = scalar_select %p38_p0, %s615_s29, %s40_s10  }
  0x28   : > { %935 = sst [smem:[#allocation21_spill]] %s741_s16  ;;  %p746_p2 = por %p105_p13, %p104_p12 }
  0x29   : > { %936 = sst [smem:[#allocation22_spill]] %s744_s17  ;;  %p111_p3 = scmp.eq.s32.totalorder %s307_s6, 47 }
  0x2a   : > { %s937_s18 = scalar_select %p746_p2, 1, 0 }
  0x2b   : > { %p925_p4 = scmp.lt.s32.totalorder %s619_s30, 48  ;;  %p751_p5 = por %p111_p3, %p110_p1 }
  0x2c   : > { %s131_s20 = sand.u32 1, %s615_s29   ;;  %p312_p11 = scmp.ge.s32.totalorder %s619_s30, 1 }
  0x2d   : > { %s938_s19 = scalar_select %p751_p5, 1, 0 }
  0x2e   : > { %s316_s21 = scalar_select %p722_p9, [#allocation3], [#allocation11] }
  0x2f   : > { %939 = sst [smem:[#allocation23_spill]] %s938_s19  ;;  %s134_s27 = scalar_lea.vmem [#allocation5], %s131_s20 }
  0x30   : > { %s317_s22 = scalar_select %p722_p9, %s619_s30, 0 }
  0x31   : > { %s968_s21 = smov (!%p925_p4, %s316_s21), [#allocation13]  ;;  %s142_s8 = sshll.u32 %s134_s27, 4  ;;  %s773_s8 = int_to_ptr.vmem [resolvable:$true] %s142_s8 }
  0x32   : > { %s970_s22 = smov (!%p925_p4, %s317_s22), 0  ;;  %p769_p7 = pnand %p925_p4, %p722_p9 }
  0x33   : > { %s135_s9 = sld [smem:[%s968_s21 + %s970_s22]]  ;;  %p165_p12 = scmp.lt.s32.totalorder %s619_s30, 49 }
  0x34   : > { %s782_s14 = sld [smem:[#allocation4 + %s619_s30]]  ;;  %s132_s29 = scalar_lea.sflag [#allocation6], %s131_s20 }
  0x35   : > { %p777_p13 = pnand %p312_p11, %p165_p12  ;;  %s788_s17 = sld [smem:[#allocation4 + %s710_s7]] }
  0x36   : > { %p447_p0 = pneg %p769_p7  ;;  %s450_s23 = scalar_lea.hbm %s918_s2, 384 }
  0x37   : > { %s941_s10 = scalar_select %p777_p13, 1, 0 }
  0x39   : > { %s310_s12 = sshll.u32 %s135_s9, 4 }
  0x3a   : > { %s140_s27 = scalar_lea.hbm %s918_s2, %s310_s12 }
  0x3b   : > { %s445_s16 = scalar_lea.hbm %s140_s27, 16  ;;  %p451_p11 = scmp.lt.s32.totalorder %s140_s27, %s918_s2 }
  0x3c   : > { %p446_p9 = scmp.ne.s32.totalorder %s140_s27, %s445_s16  ;;  %p452_p12 = scmp.lt.s32.totalorder %s450_s23, %s445_s16 }
  0x3e   : > { %p448_p1 = pnand %p447_p0, %p446_p9  ;;  %p453_p4 = por %p452_p12, %p451_p11 }
  0x40   : > { %p449_p3 = pneg %p448_p1 }
  0x42   : > { %p454_p8 = pnand %p453_p4, %p449_p3 }
  0x44   : > { %457 = shalt.err (!%p454_p8)
}
  0x45   : > { %s458_s20 = scalar_lea.vmem %s773_s8, 16  ;;  %s623_s12 = smov [#allocation5]  }
  0x46   : > { %p459_p6 = scmp.ne.s32.totalorder %s773_s8, %s458_s20  ;;  %s463_s15 = sshll.u32 %s623_s12, 4  ;;  %s464_s15 = int_to_ptr.vmem [resolvable:$false] %s463_s15 }
  0x47   : > { %s465_s11 = scalar_lea.vmem %s464_s15, 32  ;;  %p466_p1 = scmp.lt.s32.totalorder %s773_s8, %s464_s15 }
  0x48   : > { %p461_p5 = pnand %p459_p6, %p447_p0  ;;  %p467_p2 = scmp.lt.s32.totalorder %s465_s11, %s458_s20 }
  0x4a   : > { %p462_p9 = pneg %p461_p5  ;;  %p468_p10 = por %p467_p2, %p466_p1 }
  0x4c   : > { %p469_p13 = pnand %p468_p10, %p462_p9 }
  0x4e   : > { %472 = shalt.err (!%p469_p13)
}
  0x4f   : > { %331 = dma.hbm_to_vmem [thread:$0]  (!%p769_p7), %s140_s27, 16, %s773_s8, %s132_s29  }
  0x50   : > { %p75_p6 = scmp.ne.s32.totalorder %s603_s26, %s599_s25  ;;  %p81_p8 = scmp.ne.s32.totalorder %s599_s25, %s595_s24 }
  0x51   : > { %p942_p10 = scmp.eq.s32.totalorder %s619_s30, 0  ;;  %p943_p4 = scmp.eq.s32.totalorder %s706_s5, 0 }
  0x52   : > { %s65_s16 = ssub.s32 %s782_s14, %s788_s17  ;;  %s68_s19 = sadd.s32 1, %s603_s26 }
  0x53   : > { %p77_p2 = por %p75_p6, %p942_p10  ;;  %p812_p5 = por %p81_p8, %p943_p4 }
  0x54   : > { %p66_p13 = scmp.eq.s32.totalorder %s65_s16, 0  ;;  %s149_s6 = sand.u32 1, %s603_s26  }
  0x55   : > { %s944_s23 = scalar_select %p812_p5, 1, 0 }
  0x56   : > { %s319_s21 = scalar_select %p77_p2, [#allocation4], [#allocation12] }
  0x57   : > { %s821_s22 = scalar_select %p66_p13, %s603_s26, %s68_s19  }
  0x58   : > { %s320_s9 = scalar_select %p77_p2, %s619_s30, 0 }
  0x59   : > { %p945_p0 = scmp.lt.s32.totalorder %s619_s30, 48  ;;  %s152_s8 = scalar_lea.vmem [#allocation8], %s149_s6 }
  0x5a   : > { %s160_s17 = sshll.u32 %s152_s8, 4  ;;  %s150_s15 = scalar_lea.sflag [#allocation9], %s149_s6  ;;  %s834_s17 = int_to_ptr.vmem [resolvable:$true] %s160_s17 }
  0x5b   : > { %s972_s21 = smov (!%p945_p0, %s319_s21), [#allocation14]  ;;  %p946_p7 = pmov %p945_p0 }
  0x5c   : > { %p947_p3 = pmov %p945_p0 }
  0x5d   : > { %s974_s9 = smov (!%p946_p7, %s320_s9), 0 }
  0x5e   : > { %p830_p11 = pnand %p947_p3, %p77_p2  ;;  %s153_s29 = sld [smem:[%s972_s21 + %s974_s9]] }
  0x5f   : > { %s478_s21 = scalar_lea.hbm %s919_s3, 1024 }
  0x60   : > { %p475_p9 = pneg %p830_p11 }
  0x64   : > { %s311_s14 = sshll.u32 %s153_s29, 4 }
  0x65   : > { %s158_s12 = scalar_lea.hbm %s919_s3, %s311_s14 }
  0x66   : > { %s473_s11 = scalar_lea.hbm %s158_s12, 16  ;;  %p479_p8 = scmp.lt.s32.totalorder %s158_s12, %s919_s3 }
  0x67   : > { %p474_p12 = scmp.ne.s32.totalorder %s158_s12, %s473_s11  ;;  %p480_p10 = scmp.lt.s32.totalorder %s478_s21, %s473_s11 }
  0x69   : > { %p476_p1 = pnand %p475_p9, %p474_p12  ;;  %p481_p2 = por %p480_p10, %p479_p8 }
  0x6b   : > { %p477_p6 = pneg %p476_p1 }
  0x6d   : > { %p482_p4 = pnand %p481_p2, %p477_p6 }
  0x6f   : > { %485 = shalt.err (!%p482_p4)
}
  0x70   : > { %s486_s6 = scalar_lea.vmem %s834_s17, 16  ;;  %s624_s29 = smov [#allocation8]  }
  0x71   : > { %p487_p13 = scmp.ne.s32.totalorder %s834_s17, %s486_s6  ;;  %s491_s14 = sshll.u32 %s624_s29, 4  ;;  %s492_s14 = int_to_ptr.vmem [resolvable:$false] %s491_s14 }
  0x72   : > { %s493_s27 = scalar_lea.vmem %s492_s14, 32  ;;  %p494_p3 = scmp.lt.s32.totalorder %s834_s17, %s492_s14 }
  0x73   : > { %p489_p0 = pnand %p487_p13, %p475_p9  ;;  %p495_p12 = scmp.lt.s32.totalorder %s493_s27, %s486_s6 }
  0x75   : > { %p490_p7 = pneg %p489_p0  ;;  %p496_p1 = por %p495_p12, %p494_p3 }
  0x77   : > { %p497_p5 = pnand %p496_p1, %p490_p7 }
  0x79   : > { %500 = shalt.err (!%p497_p5)
}
  0x7a   : > { %336 = dma.hbm_to_vmem [thread:$0]  (!%p830_p11), %s158_s12, 16, %s834_s17, %s150_s15  }
  0x7b   : > { %p949_p6 = scmp.ne.s32.totalorder %s941_s10, 0 }
  0x7c   : > { %s171_s20 = sand.u32 (!%p949_p6), 1, %s611_s28   ;;  %p950_p9 = scmp.ne.s32.totalorder (!%p949_p6), %s934_s13, 0 }
  0x7d   : > { %169 = sbr.rel (%p949_p6) target bundleno = 159 (0x9f), region = 28  ;;  %s172_s11 = scalar_lea.sflag (!%p949_p6), [#allocation6], %s171_s20 }
  0x7e   : > { %s174_s16 = scalar_lea.vmem (!%p949_p6), [#allocation5], %s171_s20 }
  0x82   : > { %570 = dma.done.wait (%p950_p9), %s172_s11, 16  }
  0x83   : > { %572 = vsyncadd (%p950_p9), %s172_s11, 4294967280  ;;  %s179_s19 = sand.u32 1, %s599_s25   ;;  %p951_p5 = scmp.ne.s32.totalorder %s944_s23, 0 }
  0x84   : > { %s180_s21 = scalar_lea.sflag [#allocation9], %s179_s19  ;;  %s182_s24 = scalar_lea.vmem [#allocation8], %s179_s19 }
  0x85   : > { %574 = dma.done.wait (%p951_p5), %s180_s21, 16  }
  0x86   : > { %576 = vsyncadd (%p951_p5), %s180_s21, 4294967280  ;;  %s203_s10 = sand.u32 1, %s587_s1   ;;  %s313_s15 = sshll.u32 %s706_s5, 4  ;;  %v207_v0 = vld [vmem:[%s174_s16] sm:$0x1] }
  0x87   : > { %s204_s17 = scalar_lea.vmem [#allocation10], %s203_s10  ;;  %v208_v1 = vld [vmem:[%s182_s24] sm:$0x1]  ;;  %s222_s8 = scalar_lea.hbm %s920_s4, %s313_s15 }
  0x88   : > { %s224_s12 = sshll.u32 %s204_s17, 4  ;;  %v209_v2 = vadd.f32 %v208_v1, %v207_v0  ;;  %s212_s6 = scalar_lea.sflag [#allocation7], %s203_s10  ;;  %s225_s12 = int_to_ptr.vmem [resolvable:$true] %s224_s12 }
  0x89   : > { %s501_s29 = scalar_lea.vmem %s225_s12, 16  ;;  %p952_p8 = scmp.ne.s32.totalorder %s937_s18, 0 }
  0x8a   : > { %210 = vst [vmem:[%s204_s17] sm:$0x1] %v209_v2  ;;  %p502_p11 = scmp.ne.s32.totalorder %s225_s12, %s501_s29  ;;  %s625_s23 = smov [#allocation10]  }
  0x8b   : > { %s505_s14 = sshll.u32 %s625_s23, 4  ;;  %s506_s14 = int_to_ptr.vmem [resolvable:$false] %s505_s14 }
  0x8c   : > { %p503_p10 = pnand %p502_p11, %p952_p8  ;;  %s507_s27 = scalar_lea.vmem %s506_s14, 32 }
  0x8d   : > { %p508_p4 = scmp.lt.s32.totalorder %s225_s12, %s506_s14  ;;  %p509_p13 = scmp.lt.s32.totalorder %s507_s27, %s501_s29 }
  0x8e   : > { %p504_p2 = pneg %p503_p10 }
  0x8f   : > { %p510_p0 = por %p509_p13, %p508_p4 }
  0x91   : > { %p511_p7 = pnand %p510_p0, %p504_p2 }
  0x93   : > { %514 = shalt.err (!%p511_p7)
}
  0x94   : > { %s515_s5 = scalar_lea.hbm %s222_s8, 16  ;;  %s519_s16 = scalar_lea.hbm %s920_s4, 768 }
  0x95   : > { %p516_p3 = scmp.ne.s32.totalorder %s222_s8, %s515_s5  ;;  %p520_p6 = scmp.lt.s32.totalorder %s222_s8, %s920_s4 }
  0x96   : > { %p521_p9 = scmp.lt.s32.totalorder %s519_s16, %s515_s5 }
  0x97   : > { %p517_p12 = pnand %p516_p3, %p952_p8 }
  0x98   : > { %p522_p5 = por %p521_p9, %p520_p6 }
  0x99   : > { %p518_p1 = pneg %p517_p12 }
  0x9b   : > { %p523_p11 = pnand %p522_p5, %p518_p1 }
  0x9d   : > { %526 = shalt.err (!%p523_p11)
}
  0x9e   : > { %324 = dma.vmem_to_hbm [thread:$0]  (%p952_p8), %s225_s12, 16, %s222_s8, %s212_s6  }
  0x9f PF: > { %s953_s24 = sld [smem:[#allocation23_spill]]  ;;  %p342_p10 = scmp.ge.s32.totalorder %s619_s30, 2 }
  0xa0   : > { %s236_s10 = sand.u32 1, %s583_s0  }
  0xa1   : > { %s237_s17 = scalar_lea.sflag [#allocation7], %s236_s10 }
  0xa5   : > { %p954_p2 = scmp.ne.s32.totalorder %s953_s24, 0 }
  0xa7   : > { %p338_p4 = pnand %p342_p10, %p954_p2 }
  0xa9   : > { %p339_p13 = pneg %p338_p4 }
  0xab   : > { %578 = dma.done.wait (%p339_p13), %s237_s17, 16  }
  0xac   : > { %580 = vsyncadd (%p339_p13), %s237_s17, 4294967280  ;;  %s955_s15 = sld [smem:[#allocation19_spill]]  ;;  %p28_p8 = scmp.ge.s32.totalorder %s710_s7, 50  }
  0xad   : > { %s956_s23 = sld [smem:[#allocation21_spill]]  ;;  %s959_s0 = smov %s587_s1 }
  0xae   : > { %s957_s18 = sld [smem:[#allocation20_spill]]  ;;  %s961_s24 = smov %s599_s25 }
  0xaf   : > { %s958_s29 = sld [smem:[#allocation22_spill]]  ;;  %s962_s25 = smov %s603_s26 }
  0xb0   : > { %s963_s26 = smov %s821_s22  ;;  %s964_s27 = smov %s611_s28 }
  0xb1   : > { %s966_s30 = smov %s710_s7  ;;  %30 = sbr.rel (!%p28_p8) target bundleno = 26 (0x1a), region = 86 }
  0xb2   : > { %s960_s1 = smov %s955_s15 }
  0xb4   : > { %s965_s28 = smov %s957_s18 }
  0xb6   :  { %241 = vsyncpa [#allocation6], 1 }
  0xb7   :  { %243 = vsyncpa [#allocation6 + $0x1], 1 }
  0xb8   :  { %244 = vsyncpa [#allocation9], 1 }
  0xb9   :  { %246 = vsyncpa [#allocation9 + $0x1], 1 }
  0xba   :  { %247 = vsyncpa [#allocation7], 1 }
  0xbb   :  { %249 = vsyncpa [#allocation7 + $0x1], 1 }

</bundles_post_ra>
